<compile_context>
chip_gen: v7x
topology: tpu7x:2x2x1
jax: 0.10.0
libtpu: 0.0.40
codegen_flags: <defaults>
</compile_context>

<pallas_src>
import jax
import jax.numpy as jnp
from jax import lax
from jax.experimental import pallas as pl
from jax.experimental.pallas import tpu as pltpu


def _round_up(x, m):
    return ((x + m - 1) // m) * m


def _sublane_multiple(dtype):
    isz = jnp.dtype(dtype).itemsize
    if isz >= 4:
        return 8
    if isz == 2:
        return 16
    return 32


def _vmem_budget_bytes():
    """Physical VMEM minus headroom; conservative (v7x) default if query fails."""
    cap = 64 << 20
    try:
        info_fn = getattr(pltpu, "get_tpu_info", None)
        if info_fn is not None:
            cap = int(info_fn().vmem_capacity_bytes)
    except Exception:
        pass
    return max(cap - (16 << 20), 32 << 20)


def prepare_np_linear_weight(weight, dtype=None):
    """One-time layout prep: (out_features, in_features) -> (in_features, out_features).

    Cache the result at parameter-init time and call np_linear(..., weight_is_prepared=True)
    to avoid a full weight transpose + HBM copy on every forward call.
    """
    w_t = jnp.asarray(weight).T
    if dtype is not None:
        w_t = w_t.astype(dtype)
    return w_t


# ----------------------------- kernels ---------------------------------------


def _mm_resident_kernel(x_ref, w_ref, o_ref):
    # Whole (padded) weight is resident in VMEM; single pass over K.
    o_ref[...] = jnp.dot(
        x_ref[...], w_ref[...], preferred_element_type=jnp.float32
    ).astype(o_ref.dtype)


def _mm_kernel_f32_out(x_ref, w_ref, o_ref):
    # f32 output block is resident across the K grid axis -> accumulate in place.
    @pl.when(pl.program_id(2) == 0)
    def _():
        o_ref[...] = jnp.zeros_like(o_ref)

    o_ref[...] += jnp.dot(x_ref[...], w_ref[...], preferred_element_type=jnp.float32)


def _mm_kernel_acc(x_ref, w_ref, o_ref, acc_ref):
    # Non-f32 output: keep an f32 accumulator scratch across the K axis.
    @pl.when(pl.program_id(2) == 0)
    def _():
        acc_ref[...] = jnp.zeros_like(acc_ref)

    acc_ref[...] += jnp.dot(x_ref[...], w_ref[...], preferred_element_type=jnp.float32)

    @pl.when(pl.program_id(2) == pl.num_programs(2) - 1)
    def _():
        o_ref[...] = acc_ref[...].astype(o_ref.dtype)


# ----------------------------- wrapper ----------------------------------------


def np_linear(
    x,
    weight,
    *,
    weight_is_prepared=False,
    tile_m=512,
    tile_n=512,
    tile_k=512,
    small_m_fallback=True,
    allow_resident=True,
):
    """y = x @ weight.T.

    weight: (out_features, in_features), or (in_features, out_features) if
    weight_is_prepared=True (see prepare_np_linear_weight).
    """
    x = jnp.asarray(x)
    weight = jnp.asarray(weight)

    if weight_is_prepared:
        K, N = weight.shape
        w_t = weight
    else:
        N, K = weight.shape
        w_t = None  # transposed lazily below (prefer prepared weights)
    assert x.shape[-1] == K

    lead_shape = x.shape[:-1]
    x2d = x.reshape(-1, K)
    M = x2d.shape[0]
    out_dtype = x.dtype

    # --- Tiny-M fallback: XLA native path beats pad copies + grid launch overhead. ---
    if small_m_fallback and M < 128:
        if weight_is_prepared:
            y = jnp.dot(x2d, w_t, preferred_element_type=jnp.float32)
        else:
            y = lax.dot_general(
                x2d, weight, (((1,), (1,)), ((), ())),
                preferred_element_type=jnp.float32,
            )
        return y.astype(out_dtype).reshape(*lead_shape, N)

    if w_t is None:
        # TODO(synk): callers should cache prepare_np_linear_weight(weight) once and pass
        # weight_is_prepared=True; this per-call transpose is only a fallback.
        w_t = weight.T

    x_bytes = jnp.dtype(x.dtype).itemsize
    w_bytes = jnp.dtype(w_t.dtype).itemsize
    sub_m = _sublane_multiple(x.dtype)
    vmem_cap = _vmem_budget_bytes()

    # --- Resident-weight fast path: weight DMA'd from HBM exactly once. -----------
    K128 = _round_up(K, 128)
    N128 = _round_up(N, 128)
    tm_r = min(tile_m, _round_up(M, sub_m))
    Mp_r = _round_up(M, tm_r)
    if Mp_r // tm_r == 1 and M >= 256:  # keep both v7x TensorCores busy
        tm_r = _round_up(-(-M // 2), sub_m)
        Mp_r = _round_up(M, tm_r)
    resident_vmem = (
        2 * K128 * N128 * w_bytes      # weight (budget for default double-buffering)
        + 2 * tm_r * K128 * x_bytes    # x blocks
        + 2 * tm_r * N128 * x_bytes    # out blocks
    )
    use_resident = allow_resident and (resident_vmem + (4 << 20) <= vmem_cap)

    if use_resident:
        x_p = x2d if (Mp_r, K128) == (M, K) else jnp.pad(
            x2d, ((0, Mp_r - M), (0, K128 - K)))
        w_p = w_t if (K128, N128) == (K, N) else jnp.pad(
            w_t, ((0, K128 - K), (0, N128 - N)))

        grid = (Mp_r // tm_r,)
        cost = pl.CostEstimate(
            flops=2 * Mp_r * N128 * K128,
            bytes_accessed=(Mp_r * K128 * x_bytes
                            + K128 * N128 * w_bytes
                            + Mp_r * N128 * x_bytes),
            transcendentals=0,
        )
        vmem_limit = int(min(max(resident_vmem + (8 << 20), 32 << 20), vmem_cap))

        out2d = pl.pallas_call(
            _mm_resident_kernel,
            out_shape=jax.ShapeDtypeStruct((Mp_r, N128), out_dtype),
            grid_spec=pltpu.PrefetchScalarGridSpec(
                num_scalar_prefetch=0,
                grid=grid,
                in_specs=[
                    pl.BlockSpec((tm_r, K128), lambda i: (i, 0)),
                    # Constant block index -> fetched from HBM once, stays in VMEM.
                    pl.BlockSpec((K128, N128), lambda i: (0, 0)),
                ],
                out_specs=pl.BlockSpec((tm_r, N128), lambda i: (i, 0)),
            ),
            compiler_params=pltpu.CompilerParams(
                dimension_semantics=("parallel",),
                vmem_limit_bytes=vmem_limit,
            ),
            cost_estimate=cost,
        )(x_p, w_p)

        out2d = out2d[:M, :N]
        return out2d.reshape(*lead_shape, N)

    # --- General tiled path (3-D grid with K reduction). --------------------------
    tm = min(tile_m, _round_up(M, sub_m))
    tn = min(tile_n, _round_up(N, 128))
    tk = min(tile_k, _round_up(K, 128))
    Mp, Np, Kp = _round_up(M, tm), _round_up(N, tn), _round_up(K, tk)

    # v7x: guarantee >= 2 blocks along a parallel axis when the problem allows it.
    if (Mp // tm) * (Np // tn) == 1:
        if M >= 256:
            tm = _round_up(-(-M // 2), sub_m)
            Mp = _round_up(M, tm)
        elif N >= 256:
            tn = _round_up(-(-N // 2), 128)
            Np = _round_up(N, tn)

    x_p = x2d if (Mp, Kp) == (M, K) else jnp.pad(x2d, ((0, Mp - M), (0, Kp - K)))
    w_p = w_t if (Kp, Np) == (K, N) else jnp.pad(w_t, ((0, Kp - K), (0, Np - N)))

    grid = (Mp // tm, Np // tn, Kp // tk)

    acc_in_output = out_dtype == jnp.float32
    kernel = _mm_kernel_f32_out if acc_in_output else _mm_kernel_acc
    scratch = [] if acc_in_output else [pltpu.VMEM((tm, tn), jnp.float32)]

    tiled_vmem = 2 * (tm * tk * x_bytes + tk * tn * w_bytes + tm * tn * x_bytes)
    if not acc_in_output:
        tiled_vmem += tm * tn * 4
    vmem_limit = int(min(max(tiled_vmem + (8 << 20), 32 << 20), vmem_cap))

    cost = pl.CostEstimate(
        flops=2 * Mp * Np * Kp,
        bytes_accessed=(Mp * Kp * grid[1] * x_bytes
                        + Kp * Np * grid[0] * w_bytes
                        + Mp * Np * x_bytes),
        transcendentals=0,
    )

    out2d = pl.pallas_call(
        kernel,
        out_shape=jax.ShapeDtypeStruct((Mp, Np), out_dtype),
        grid_spec=pltpu.PrefetchScalarGridSpec(
            num_scalar_prefetch=0,
            grid=grid,
            in_specs=[
                pl.BlockSpec((tm, tk), lambda i, j, k: (i, k)),
                pl.BlockSpec((tk, tn), lambda i, j, k: (k, j)),
            ],
            out_specs=pl.BlockSpec((tm, tn), lambda i, j, k: (i, j)),
            scratch_shapes=scratch,
        ),
        compiler_params=pltpu.CompilerParams(
            dimension_semantics=("parallel", "parallel", "arbitrary"),
            vmem_limit_bytes=vmem_limit,
        ),
        cost_estimate=cost,
    )(x_p, w_p)

    out2d = out2d[:M, :N]
    return out2d.reshape(*lead_shape, N)


# ----------------------------- demo / self-test --------------------------------


if __name__ == "__main__":
    key = jax.random.PRNGKey(0)
    kx, kw, kb, kx2, kw2, kx3, kw3, kx4, kw4 = jax.random.split(key, 9)
    HI = lax.Precision.HIGHEST

    # --- 1) Small test at module-implied shapes (force the Pallas kernel path). ---
    batch, seq = 2, 8
    in_features, out_features = 32, 64
    weight = jax.random.normal(kw, (out_features, in_features), dtype=jnp.float32) * 0.1
    bias = jax.random.normal(kb, (out_features,), dtype=jnp.float32)  # registered, unused in forward
    x = jax.random.normal(kx, (batch, seq, in_features), dtype=jnp.float32)

    y = jax.block_until_ready(np_linear(x, weight, small_m_fallback=False))
    y_ref = jnp.einsum("bsi,oi->bso", x, weight, precision=HI)
    assert y.shape == (batch, seq, out_features)
    assert jnp.allclose(y, y_ref, atol=1e-5, rtol=1e-5)

    # --- 2) Larger test: prepared (cached) weight, resident-weight fast path. -----
    x_big = jax.random.normal(kx2, (4, 96, 384), dtype=jnp.float32)
    w_big = jax.random.normal(kw2, (512, 384), dtype=jnp.float32) * 0.05
    w_big_t = prepare_np_linear_weight(w_big)  # hoisted one-time transpose

    y_big = jax.block_until_ready(np_linear(x_big, w_big_t, weight_is_prepared=True))
    y_big_ref = jnp.einsum("bsi,oi->bso", x_big, w_big, precision=HI)
    assert y_big.shape == (4, 96, 512)
    assert jnp.allclose(y_big, y_big_ref, atol=1e-4, rtol=1e-4)

    # --- 3) Tiled K-reduction path (force non-resident) with ragged K padding. ----
    x_t = jax.random.normal(kx3, (2, 128, 1152), dtype=jnp.float32)
    w_t_raw = jax.random.normal(kw3, (256, 1152), dtype=jnp.float32) * 0.05
    y_t = jax.block_until_ready(np_linear(x_t, w_t_raw, allow_resident=False))
    y_t_ref = jnp.einsum("bsi,oi->bso", x_t, w_t_raw, precision=HI)
    assert y_t.shape == (2, 128, 256)
    assert jnp.allclose(y_t, y_t_ref, atol=1e-3, rtol=1e-3)

    # --- 4) bf16 inputs -> f32 accumulator scratch variant (tiled path). ----------
    x_bf = (jax.random.normal(kx4, (2, 128, 256), dtype=jnp.float32)).astype(jnp.bfloat16)
    w_bf = (jax.random.normal(kw4, (384, 256), dtype=jnp.float32) * 0.05).astype(jnp.bfloat16)
    y_bf = jax.block_until_ready(np_linear(x_bf, w_bf, allow_resident=False))
    y_bf_ref = jnp.einsum(
        "bsi,oi->bso",
        x_bf.astype(jnp.float32),
        w_bf.astype(jnp.float32),
        precision=HI,
    )
    assert y_bf.shape == (2, 128, 384)
    assert jnp.allclose(y_bf.astype(jnp.float32), y_bf_ref, atol=3e-2, rtol=3e-2)

    print("KERNEL_OK")
</pallas_src>

<mosaic_0001>
module attributes {stable_mosaic.version = 11 : i64} {
  func.func @_mm_resident_kernel(%arg0: i32, %arg1: memref<16x128xf32, #tpu.memory_space<vmem>>, %arg2: memref<128x128xf32, #tpu.memory_space<vmem>>, %arg3: memref<16x128xf32, #tpu.memory_space<vmem>>) attributes {dimension_semantics = [#tpu.dimension_semantics<parallel>], iteration_bounds = array<i64: 1>, scalar_prefetch = 0 : i64, scratch_operands = 0 : i64, tpu.core_type = #tpu.core_type<tc>, window_params = [{transform_indices = @transform_0, window_bounds = array<i64: 16, 128>}, {pipeline_mode = #tpu.pipeline_mode<synchronous>, transform_indices = @transform_1, window_bounds = array<i64: 128, 128>}, {transform_indices = @transform_2, window_bounds = array<i64: 16, 128>}]} {
    %c0 = arith.constant 0 : index
    %c0_0 = arith.constant 0 : index
    %0 = vector.load %arg1[%c0, %c0_0] : memref<16x128xf32, #tpu.memory_space<vmem>>, vector<16x128xf32>
    %c0_1 = arith.constant 0 : index
    %c0_2 = arith.constant 0 : index
    %1 = vector.load %arg2[%c0_1, %c0_2] : memref<128x128xf32, #tpu.memory_space<vmem>>, vector<128x128xf32>
    %cst = arith.constant dense<0.000000e+00> : vector<16x128xf32>
    %2 = tpu.matmul %0, %1, %cst {dimension_numbers = #tpu.dot_dimension_numbers<[1], [0], [0], [1], [0, 0, 1, 1], [], []>} : vector<16x128xf32>, vector<128x128xf32>, vector<16x128xf32> -> vector<16x128xf32>
    %c0_3 = arith.constant 0 : index
    %c0_4 = arith.constant 0 : index
    %3 = vector.load %arg3[%c0_3, %c0_4] : memref<16x128xf32, #tpu.memory_space<vmem>>, vector<16x128xf32>
    tpu.vector_store %arg3[%c0_3, %c0_4], %2 {strides = array<i32>} : memref<16x128xf32, #tpu.memory_space<vmem>>, vector<16x128xf32>,
    return
  }
  func.func @transform_0(%arg0: i32) -> (i32, i32) {
    %c0_i32 = arith.constant 0 : i32
    %c0_i32_0 = arith.constant 0 : i32
    return %arg0, %c0_i32 : i32, i32
  }
  func.func @transform_1(%arg0: i32) -> (i32, i32) {
    %c0_i32 = arith.constant 0 : i32
    %c0_i32_0 = arith.constant 0 : i32
    %c0_i32_1 = arith.constant 0 : i32
    return %c0_i32, %c0_i32_0 : i32, i32
  }
  func.func @transform_2(%arg0: i32) -> (i32, i32) {
    %c0_i32 = arith.constant 0 : i32
    %c0_i32_0 = arith.constant 0 : i32
    return %arg0, %c0_i32 : i32, i32
  }
}

</mosaic_0001>

<bundles_post_ra>
// kernel: tpu_custom_call.1
= control target key start
LH: loop header
LB: loop body
LE: loop exit
PB: predicated region body
PF: predicated region fallthrough
CT: control target
= control target key end

     0   :  { %7 = vsyncpa [#allocation3], 0  ;;  %s380_s0 = inlined_call_operand.hbm [shape: f32[16,128], index: 0, kind: input, shape index: {}]   ;;  %s381_s1 = inlined_call_operand.hbm [shape: f32[128,128], index: 1, kind: input, shape index: {}]   ;;  %s382_s2 = inlined_call_operand.hbm [shape: f32[16,128], index: 2, kind: output, shape index: {}]  }
   0x1   :  { %8 = vsyncpa [#allocation6], 0 }
   0x2   :  { %9 = vsyncpa [#allocation4], 0  ;;  %s315_s9 = smov [#allocation2]   ;;  %s243_s13 = scalar_lea.hbm %s380_s0, 256 }
   0x3   :  { %s15_s10 = sshll.u32 %s315_s9, 4  ;;  %p244_p0 = scmp.ne.s32.totalorder %s380_s0, %s243_s13  ;;  %s16_s10 = int_to_ptr.vmem [resolvable:$true] %s15_s10 }
   0x4   :  { %p247_p1 = scmp.lt.u32.totalorder %s243_s13, %s380_s0 }
   0x6   :  { %p249_p2 = pnand %p247_p1, %p244_p0 }
   0x8   :  { %252 = shalt.err (!%p249_p2)
}
   0x9   :  { %s253_s18 = scalar_lea.vmem %s16_s10, 256  ;;  %p258_p4 = scmp.lt.s32.totalorder %s16_s10, %s16_s10 }
   0xa   :  { %p254_p3 = scmp.ne.s32.totalorder %s16_s10, %s253_s18  ;;  %p259_p5 = scmp.lt.s32.totalorder %s253_s18, %s253_s18 }
   0xc   :  { %p260_p6 = por %p259_p5, %p258_p4 }
   0xe   :  { %p261_p7 = pnand %p260_p6, %p254_p3 }
  0x10   :  { %264 = shalt.err (!%p261_p7)
}
  0x11   :  { %s316_s19 = smov 128   ;;  %s317_s20 = smov 8  }
  0x12   :  { %21 = dma.hbm_to_vmem [thread:$0]  %s380_s0, 256, %s16_s10, [#allocation3], %s316_s19, %s316_s19, %s317_s20  }
  0x13   :  { %s318_s23 = smov [#allocation5]   ;;  %s265_s27 = scalar_lea.hbm %s381_s1, 2048 }
  0x14   :  { %s27_s24 = sshll.u32 %s318_s23, 4  ;;  %p266_p8 = scmp.ne.s32.totalorder %s381_s1, %s265_s27  ;;  %s28_s24 = int_to_ptr.vmem [resolvable:$true] %s27_s24 }
  0x15   :  { %p269_p9 = scmp.lt.u32.totalorder %s265_s27, %s381_s1 }
  0x17   :  { %p271_p10 = pnand %p269_p9, %p266_p8 }
  0x19   :  { %274 = shalt.err (!%p271_p10)
}
  0x1a   :  { %s275_s4 = scalar_lea.vmem %s28_s24, 2048  ;;  %p280_p12 = scmp.lt.s32.totalorder %s28_s24, %s28_s24 }
  0x1b   :  { %p276_p11 = scmp.ne.s32.totalorder %s28_s24, %s275_s4  ;;  %p281_p13 = scmp.lt.s32.totalorder %s275_s4, %s275_s4 }
  0x1d   :  { %p282_p0 = por %p281_p13, %p280_p12 }
  0x1f   :  { %p283_p1 = pnand %p282_p0, %p276_p11 }
  0x21   :  { %286 = shalt.err (!%p283_p1)
}
  0x22   :  { %33 = dma.hbm_to_vmem [thread:$0]  %s381_s1, 2048, %s28_s24, [#allocation6], %s316_s19, %s316_s19, %s317_s20  }
  0x23   :  { %309 = dma.done.wait [#allocation3], 256  }
  0x24   :  { %310 = vsyncadd [#allocation3], 4294967040 }
  0x25   :  { %311 = dma.done.wait [#allocation6], 2048  }
  0x26   :  { %312 = vsyncadd [#allocation6], 4294965248  ;;  %v42_v0 = vld [vmem:[#allocation5] sm:$0xff]  ;;  %v43_v1 = vld [vmem:[#allocation5 + $0x8] sm:$0xff]  ;;  %s319_s1 = smov [#allocation7]  }
  0x27   :  { %v44_v2 = vld [vmem:[#allocation5 + $0x10] sm:$0xff]  ;;  %v206_v3 = vpack.c.bf16 %v43_v1, %v42_v0  ;;  %v45_v4 = vld [vmem:[#allocation5 + $0x18] sm:$0xff]  ;;  %v46_v6 = vld [vmem:[#allocation5 + $0x20] sm:$0xff]  ;;  %s140_s6 = sshll.u32 %s319_s1, 4  ;;  %s141_s6 = int_to_ptr.vmem [resolvable:$true] %s140_s6 }
  0x28   :  { %v210_v5 = vpack.c.bf16 %v45_v4, %v44_v2  ;;  %v47_v7 = vld [vmem:[#allocation5 + $0x28] sm:$0xff]  ;;  %v40_v9 = vld [vmem:[#allocation2] sm:$0xff]  ;;  %v49_v11 = vld [vmem:[#allocation5 + $0x38] sm:$0xff]  ;;  %s287_s7 = scalar_lea.vmem %s141_s6, 256  ;;  %p292_p3 = scmp.lt.s32.totalorder %s141_s6, %s141_s6 }
  0x29   :  { %207 = vmatprep.subr.bf16.mxu0 %v206_v3  ;;  %v214_v8 = vpack.c.bf16 %v47_v7, %v46_v6  ;;  %v48_v10 = vld [vmem:[#allocation5 + $0x30] sm:$0xff]  ;;  %203 = vmatprep.mubr.f32.mxu0 %v40_v9  ;;  %v50_v13 = vld [vmem:[#allocation5 + $0x40] sm:$0xff]  ;;  %v51_v14 = vld [vmem:[#allocation5 + $0x48] sm:$0xff]  ;;  %p288_p2 = scmp.ne.s32.totalorder %s141_s6, %s287_s7  ;;  %p293_p4 = scmp.lt.s32.totalorder %s287_s7, %s287_s7 }
  0x2a   :  { %209 = vmatpush3.bf16.msra.mxu0 %v206_v3  ;;  %v218_v12 = vpack.c.bf16 %v49_v11, %v48_v10  ;;  %v222_v15 = vpack.c.bf16 %v51_v14, %v50_v13  ;;  %v52_v16 = vld [vmem:[#allocation5 + $0x50] sm:$0xff]  ;;  %v53_v17 = vld [vmem:[#allocation5 + $0x58] sm:$0xff]  ;;  %v54_v19 = vld [vmem:[#allocation5 + $0x60] sm:$0xff] }
  0x2b   :  { %211 = vmatprep.subr.bf16.mxu0 %v210_v5  ;;  %v226_v18 = vpack.c.bf16 %v53_v17, %v52_v16  ;;  %v55_v20 = vld [vmem:[#allocation5 + $0x68] sm:$0xff]  ;;  %v56_v22 = vld [vmem:[#allocation5 + $0x70] sm:$0xff]  ;;  %v57_v23 = vld [vmem:[#allocation5 + $0x78] sm:$0xff]  ;;  %p294_p5 = por %p293_p4, %p292_p3 }
  0x2c   :  { %v230_v21 = vpack.c.bf16 %v55_v20, %v54_v19  ;;  %v234_v24 = vpack.c.bf16 %v57_v23, %v56_v22  ;;  %v41_v25 = vld [vmem:[#allocation2 + $0x8] sm:$0xff] }
  0x2d   :  { %p295_p6 = pnand %p294_p5, %p288_p2 }
  0x2e   :  { %213 = vmatpush3.bf16.msra.mxu0 %v210_v5 }
  0x2f   :  { %215 = vmatprep.subr.bf16.mxu0 %v214_v8 }
  0x32   :  { %217 = vmatpush3.bf16.msra.mxu0 %v214_v8 }
  0x33   :  { %219 = vmatprep.subr.bf16.mxu0 %v218_v12 }
  0x36   :  { %221 = vmatpush3.bf16.msra.mxu0 %v218_v12 }
  0x37   :  { %223 = vmatprep.subr.bf16.mxu0 %v222_v15 }
  0x3a   :  { %225 = vmatpush3.bf16.msra.mxu0 %v222_v15 }
  0x3b   :  { %227 = vmatprep.subr.bf16.mxu0 %v226_v18 }
  0x3e   :  { %229 = vmatpush3.bf16.msra.mxu0 %v226_v18 }
  0x3f   :  { %231 = vmatprep.subr.bf16.mxu0 %v230_v21 }
  0x42   :  { %233 = vmatpush3.bf16.msra.mxu0 %v230_v21 }
  0x43   :  { %235 = vmatprep.subr.bf16.mxu0 %v234_v24 }
  0x46   :  { %237 = vmatpush3.bf16.msra.mxu0 %v234_v24 }
  0x49   :  { %204 = vmatmul.mubr.f32.vlgmr.msra.gmra.mrb[0].mxu0 %v41_v25 }
 0x11c   :  { %v205_v26 = vpop.f32.mrb[0].mxu0 }
 0x11d   :  { %134 = vst [vmem:[#allocation7 + $0x8] sm:$0xff] %v205_v26  ;;  %v124_v27 = vpop.f32.mrb[1].mxu0 }
 0x11e   :  { %133 = vst [vmem:[#allocation7] sm:$0xff] %v124_v27 }
 0x11f   :  { %298 = shalt.err (!%p295_p6)
}
 0x120   :  { %s299_s10 = scalar_lea.hbm %s382_s2, 256 }
 0x121   :  { %p300_p7 = scmp.ne.s32.totalorder %s382_s2, %s299_s10  ;;  %p303_p8 = scmp.lt.u32.totalorder %s299_s10, %s382_s2 }
 0x123   :  { %p305_p9 = pnand %p303_p8, %p300_p7 }
 0x125   :  { %308 = shalt.err (!%p305_p9)
}
 0x126   :  { %146 = dma.vmem_to_hbm [thread:$0]  %s141_s6, 256, %s382_s2, [#allocation4], %s316_s19, %s316_s19, %s317_s20  }
 0x127   :  { %313 = dma.done.wait [#allocation4], 256  }
 0x128   :  { %314 = vsyncadd [#allocation4], 4294967040 }
 0x129   :  { %150 = vsyncpa [#allocation3], 1 }
 0x12a   :  { %151 = vsyncpa [#allocation6], 1 }
 0x12b   :  { %152 = vsyncpa [#allocation4], 1 }

</bundles_post_ra>
